<compile_context>
chip_gen: v7x
topology: tpu7x:2x2x1
jax: 0.10.0
libtpu: 0.0.40
codegen_flags: <defaults>
</compile_context>

<pallas_src>
import functools

import jax
import jax.numpy as jnp
from jax.experimental import pallas as pl
from jax.experimental.pallas import tpu as pltpu

# High-precision f32 matmuls for the pure-JAX reference so the correctness check
# compares against true f32 math (the Pallas MXU matmuls accumulate in f32).
jax.config.update("jax_default_matmul_precision", "highest")


def _round_up(a, m):
    return (a + m - 1) // m * m


def _encoder_kernel(x_ref, wconv_ref, bconv_ref, wfc_ref, bfc_ref, out_ref, *, L):
    """One batch tile per grid step.

    x_ref    : (TB*L, K*C_in)  im2col'd input rows (row = one (sample, time) pair)
    wconv_ref: (K*C_in, Hp)    conv weight, tap-major rows (k*C_in + c), H padded to 128
    bconv_ref: (1, Hp)         conv bias (zero in the padded channels)
    wfc_ref  : (Hp, Dp)        fc weight (transposed vs torch), D padded to 128
    bfc_ref  : (1, Dp)         fc bias (zero in the padded columns)
    out_ref  : (TB, Dp)        lane-dense output block
    """
    Hp = wconv_ref.shape[1]
    TB = out_ref.shape[0]

    # Conv as ONE MXU matmul over all (sample, time) rows of the tile.
    y = jnp.dot(x_ref[...], wconv_ref[...], preferred_element_type=jnp.float32)
    y = jnp.maximum(y + bconv_ref[...], 0.0)                      # (TB*L, Hp)

    # AdaptiveAvgPool1d(1): mean over time = sum * static 1/L.  The split reshape is
    # (8,128)-tile aligned when L % 8 == 0, so it does not relayout.
    pooled = y.reshape(TB, L, Hp).sum(axis=1) * (1.0 / L)         # (TB, Hp)

    # Final Linear projection; full 128-lane output block -> unmasked stores.
    out = jnp.dot(pooled, wfc_ref[...], preferred_element_type=jnp.float32)
    out_ref[...] = (out + bfc_ref[...]).astype(out_ref.dtype)


def cnn_feature_encoder(x, w_conv, b_conv, w_fc, b_fc, *, kernel_size=3,
                        batch_tile=None, vmem_limit_bytes=None):
    """Pallas implementation of CNNFeatureEncoder.forward (num_layers=1).

    x      : (B, L, C_in) float32
    w_conv : (H, C_in, K)  -- torch Conv1d weight layout
    b_conv : (H,)
    w_fc   : (D, H)        -- torch Linear weight layout
    b_fc   : (D,)
    returns (B, D) float32
    """
    B, L, C_in = x.shape
    K = kernel_size
    if K % 2 != 1:
        # PyTorch Conv1d with even K and padding=K//2 yields L+1 time steps; only the
        # module default (odd K) is supported here.
        raise ValueError("cnn_feature_encoder only supports odd kernel_size")
    H, _, _ = w_conv.shape
    D = w_fc.shape[0]
    pad = K // 2

    # ---- batch tile selection -------------------------------------------------
    if batch_tile is None:
        B8 = _round_up(max(B, 1), 8)
        tb = min(512, B8)                 # ~26 KB live VMEM per sample -> 512 fits the
                                          # 32 MiB scoped default on v5e/v6e/v7x
        if B8 >= 16 and tb >= B8:
            # Keep >= 2 grid steps when the batch allows it so the "parallel" axis
            # can be sharded across both v7x TensorCores.
            tb = _round_up(pl.cdiv(B8, 2), 8)
        batch_tile = tb
    TB = max(8, _round_up(batch_tile, 8))
    B_pad = _round_up(max(B, 1), TB)

    # ---- wrapper-side prep (cheap XLA work; removes all in-kernel relayouts) ---
    xp = jnp.pad(x.astype(jnp.float32),
                 ((0, B_pad - B), (pad, pad), (0, 0)))             # (B_pad, L+2p, C)
    if K > 1:
        cols = jnp.concatenate([xp[:, k:k + L, :] for k in range(K)], axis=-1)
    else:
        cols = xp                                                  # (B_pad, L, K*C)
    x2 = cols.reshape(B_pad * L, K * C_in)                         # (B_pad*L, K*C)

    Hp = _round_up(H, 128)
    Dp = _round_up(D, 128)
    # torch (H, C_in, K) -> (K, C_in, H) -> (K*C_in, H); column order matches im2col.
    w_conv2 = jnp.transpose(w_conv, (2, 1, 0)).reshape(K * C_in, H).astype(jnp.float32)
    w_conv2 = jnp.pad(w_conv2, ((0, 0), (0, Hp - H)))
    b_conv2 = jnp.pad(b_conv.astype(jnp.float32), (0, Hp - H)).reshape(1, Hp)
    # torch (D, H) -> (H, D), zero-padded to (Hp, Dp) (zero rows/cols keep math exact).
    w_fc2 = jnp.pad(w_fc.T.astype(jnp.float32), ((0, Hp - H), (0, Dp - D)))
    b_fc2 = jnp.pad(b_fc.astype(jnp.float32), (0, Dp - D)).reshape(1, Dp)

    kernel = functools.partial(_encoder_kernel, L=L)
    cp_kwargs = dict(dimension_semantics=("parallel",))
    if vmem_limit_bytes is not None:
        cp_kwargs["vmem_limit_bytes"] = vmem_limit_bytes

    out = pl.pallas_call(
        kernel,
        out_shape=jax.ShapeDtypeStruct((B_pad, Dp), jnp.float32),
        grid_spec=pltpu.PrefetchScalarGridSpec(
            num_scalar_prefetch=0,
            grid=(B_pad // TB,),
            in_specs=[
                pl.BlockSpec((TB * L, K * C_in), lambda b: (b, 0)),  # im2col batch tile
                pl.BlockSpec((K * C_in, Hp), lambda b: (0, 0)),      # conv weight (full)
                pl.BlockSpec((1, Hp), lambda b: (0, 0)),             # conv bias
                pl.BlockSpec((Hp, Dp), lambda b: (0, 0)),            # fc weight
                pl.BlockSpec((1, Dp), lambda b: (0, 0)),             # fc bias
            ],
            out_specs=pl.BlockSpec((TB, Dp), lambda b: (b, 0)),      # lane-dense store
        ),
        compiler_params=pltpu.CompilerParams(**cp_kwargs),
    )(x2, w_conv2, b_conv2, w_fc2, b_fc2)
    # Padded batch rows carry bias/ReLU garbage and padded D columns are zero: both
    # are sliced off here (do not remove this slice).
    return out[:B, :D]


def reference_jax(x, w_conv, b_conv, w_fc, b_fc, kernel_size=3):
    """Pure-JAX reference replicating the PyTorch forward (num_layers=1).

    Takes the same torch-layout weights as cnn_feature_encoder.
    """
    K = kernel_size
    pad = K // 2
    B, L, C = x.shape
    H = w_conv.shape[0]
    x_pad = jnp.pad(x, ((0, 0), (pad, pad), (0, 0)))
    y = jnp.zeros((B, L, H), jnp.float32)
    for k in range(K):
        y = y + jnp.einsum("blc,hc->blh", x_pad[:, k:k + L, :], w_conv[:, :, k])
    y = jnp.maximum(y + b_conv[None, None, :], 0.0)
    pooled = jnp.mean(y, axis=1)                 # (B, H)
    return pooled @ w_fc.T + b_fc[None, :]       # (B, D)


if __name__ == "__main__":
    # Small shapes consistent with the module's forward: x = [batch, L, input_dim]
    batch, L, input_dim = 2, 16, 8
    hidden_channels, output_dim, kernel_size = 32, 32, 3

    key = jax.random.PRNGKey(0)
    k_x, k_wc, k_bc, k_wf, k_bf = jax.random.split(key, 5)

    x = jax.random.normal(k_x, (batch, L, input_dim), dtype=jnp.float32)

    # Deterministic synthetic parameters in the *torch* layouts.
    fan_conv = input_dim * kernel_size
    w_conv = jax.random.uniform(k_wc, (hidden_channels, input_dim, kernel_size),
                                dtype=jnp.float32,
                                minval=-1.0 / jnp.sqrt(fan_conv),
                                maxval=1.0 / jnp.sqrt(fan_conv))
    b_conv = jax.random.uniform(k_bc, (hidden_channels,), dtype=jnp.float32,
                                minval=-1.0 / jnp.sqrt(fan_conv),
                                maxval=1.0 / jnp.sqrt(fan_conv))
    w_fc = jax.random.uniform(k_wf, (output_dim, hidden_channels), dtype=jnp.float32,
                              minval=-1.0 / jnp.sqrt(hidden_channels),
                              maxval=1.0 / jnp.sqrt(hidden_channels))
    b_fc = jax.random.uniform(k_bf, (output_dim,), dtype=jnp.float32,
                              minval=-1.0 / jnp.sqrt(hidden_channels),
                              maxval=1.0 / jnp.sqrt(hidden_channels))

    # TODO(synk): num_layers > 1 would chain additional conv+ReLU stages; the module
    # default (num_layers=1) is implemented fully here.
    out = cnn_feature_encoder(x, w_conv, b_conv, w_fc, b_fc, kernel_size=kernel_size)
    out = jax.block_until_ready(out)
    ref = reference_jax(x, w_conv, b_conv, w_fc, b_fc, kernel_size=kernel_size)
    assert out.shape == (batch, output_dim), out.shape
    assert jnp.allclose(out, ref, atol=1e-4, rtol=1e-4), float(jnp.max(jnp.abs(out - ref)))

    # Second check: batch not divisible by the tile, auto tile -> 2 grid steps.
    batch2 = 20
    x2 = jax.random.normal(jax.random.PRNGKey(1), (batch2, L, input_dim), dtype=jnp.float32)
    out2 = cnn_feature_encoder(x2, w_conv, b_conv, w_fc, b_fc, kernel_size=kernel_size)
    out2 = jax.block_until_ready(out2)
    ref2 = reference_jax(x2, w_conv, b_conv, w_fc, b_fc, kernel_size=kernel_size)
    assert out2.shape == (batch2, output_dim), out2.shape
    assert jnp.allclose(out2, ref2, atol=1e-4, rtol=1e-4), float(jnp.max(jnp.abs(out2 - ref2)))

    # Third check: explicit small tile -> 3 grid steps with batch padding.
    out3 = cnn_feature_encoder(x2, w_conv, b_conv, w_fc, b_fc,
                               kernel_size=kernel_size, batch_tile=8)
    out3 = jax.block_until_ready(out3)
    assert out3.shape == (batch2, output_dim), out3.shape
    assert jnp.allclose(out3, ref2, atol=1e-4, rtol=1e-4), float(jnp.max(jnp.abs(out3 - ref2)))

    print("KERNEL_OK")
</pallas_src>

<mosaic_0001>
module attributes {stable_mosaic.version = 11 : i64} {
  func.func @_encoder_kernel(%arg0: i32, %arg1: memref<128x24xf32, #tpu.memory_space<vmem>>, %arg2: memref<24x128xf32, #tpu.memory_space<vmem>>, %arg3: memref<1x128xf32, #tpu.memory_space<vmem>>, %arg4: memref<128x128xf32, #tpu.memory_space<vmem>>, %arg5: memref<1x128xf32, #tpu.memory_space<vmem>>, %arg6: memref<8x128xf32, #tpu.memory_space<vmem>>) attributes {dimension_semantics = [#tpu.dimension_semantics<parallel>], iteration_bounds = array<i64: 1>, scalar_prefetch = 0 : i64, scratch_operands = 0 : i64, tpu.core_type = #tpu.core_type<tc>, window_params = [{transform_indices = @transform_0, window_bounds = array<i64: 128, 24>}, {pipeline_mode = #tpu.pipeline_mode<synchronous>, transform_indices = @transform_1, window_bounds = array<i64: 24, 128>}, {pipeline_mode = #tpu.pipeline_mode<synchronous>, transform_indices = @transform_2, window_bounds = array<i64: 1, 128>}, {pipeline_mode = #tpu.pipeline_mode<synchronous>, transform_indices = @transform_3, window_bounds = array<i64: 128, 128>}, {pipeline_mode = #tpu.pipeline_mode<synchronous>, transform_indices = @transform_4, window_bounds = array<i64: 1, 128>}, {transform_indices = @transform_5, window_bounds = array<i64: 8, 128>}]} {
    %c0 = arith.constant 0 : index
    %c0_0 = arith.constant 0 : index
    %0 = vector.load %arg1[%c0, %c0_0] : memref<128x24xf32, #tpu.memory_space<vmem>>, vector<128x24xf32>
    %c0_1 = arith.constant 0 : index
    %c0_2 = arith.constant 0 : index
    %1 = vector.load %arg2[%c0_1, %c0_2] : memref<24x128xf32, #tpu.memory_space<vmem>>, vector<24x128xf32>
    %cst = arith.constant dense<0.000000e+00> : vector<128x128xf32>
    %2 = tpu.matmul %0, %1, %cst {dimension_numbers = #tpu.dot_dimension_numbers<[1], [0], [0], [1], [0, 0, 1, 1], [], []>, precision = #tpu.contract_precision<fp32>} : vector<128x24xf32>, vector<24x128xf32>, vector<128x128xf32> -> vector<128x128xf32>
    %c0_3 = arith.constant 0 : index
    %c0_4 = arith.constant 0 : index
    %3 = vector.load %arg3[%c0_3, %c0_4] : memref<1x128xf32, #tpu.memory_space<vmem>>, vector<1x128xf32>
    %4 = vector.broadcast %3 : vector<1x128xf32> to vector<128x128xf32>
    %5 = arith.addf %2, %4 : vector<128x128xf32>
    %cst_5 = arith.constant 0.000000e+00 : f32
    %6 = vector.broadcast %cst_5 : f32 to vector<128x128xf32>
    %7 = arith.maximumf %5, %6 : vector<128x128xf32>
    %8 = vector.shape_cast %7 : vector<128x128xf32> to vector<8x16x128xf32>
    %cst_6 = arith.constant dense<0.000000e+00> : vector<8x128xf32>
    %9 = vector.multi_reduction <add>, %8, %cst_6 [1] : vector<8x16x128xf32> to vector<8x128xf32>
    %cst_7 = arith.constant 6.250000e-02 : f32
    %10 = vector.broadcast %cst_7 : f32 to vector<8x128xf32>
    %11 = arith.mulf %9, %10 : vector<8x128xf32>
    %c0_8 = arith.constant 0 : index
    %c0_9 = arith.constant 0 : index
    %12 = vector.load %arg4[%c0_8, %c0_9] : memref<128x128xf32, #tpu.memory_space<vmem>>, vector<128x128xf32>
    %cst_10 = arith.constant dense<0.000000e+00> : vector<8x128xf32>
    %13 = tpu.matmul %11, %12, %cst_10 {dimension_numbers = #tpu.dot_dimension_numbers<[1], [0], [0], [1], [0, 0, 1, 1], [], []>, precision = #tpu.contract_precision<fp32>} : vector<8x128xf32>, vector<128x128xf32>, vector<8x128xf32> -> vector<8x128xf32>
    %c0_11 = arith.constant 0 : index
    %c0_12 = arith.constant 0 : index
    %14 = vector.load %arg5[%c0_11, %c0_12] : memref<1x128xf32, #tpu.memory_space<vmem>>, vector<1x128xf32>
    %15 = vector.broadcast %14 : vector<1x128xf32> to vector<8x128xf32>
    %16 = arith.addf %13, %15 : vector<8x128xf32>
    %c0_13 = arith.constant 0 : index
    %c0_14 = arith.constant 0 : index
    %17 = vector.load %arg6[%c0_13, %c0_14] : memref<8x128xf32, #tpu.memory_space<vmem>>, vector<8x128xf32>
    tpu.vector_store %arg6[%c0_13, %c0_14], %16 {strides = array<i32>} : memref<8x128xf32, #tpu.memory_space<vmem>>, vector<8x128xf32>,
    return
  }
  func.func @transform_0(%arg0: i32) -> (i32, i32) {
    %c0_i32 = arith.constant 0 : i32
    %c0_i32_0 = arith.constant 0 : i32
    return %arg0, %c0_i32 : i32, i32
  }
  func.func @transform_1(%arg0: i32) -> (i32, i32) {
    %c0_i32 = arith.constant 0 : i32
    %c0_i32_0 = arith.constant 0 : i32
    %c0_i32_1 = arith.constant 0 : i32
    return %c0_i32, %c0_i32_0 : i32, i32
  }
  func.func @transform_2(%arg0: i32) -> (i32, i32) {
    %c0_i32 = arith.constant 0 : i32
    %c0_i32_0 = arith.constant 0 : i32
    %c0_i32_1 = arith.constant 0 : i32
    return %c0_i32, %c0_i32_0 : i32, i32
  }
  func.func @transform_3(%arg0: i32) -> (i32, i32) {
    %c0_i32 = arith.constant 0 : i32
    %c0_i32_0 = arith.constant 0 : i32
    %c0_i32_1 = arith.constant 0 : i32
    return %c0_i32, %c0_i32_0 : i32, i32
  }
  func.func @transform_4(%arg0: i32) -> (i32, i32) {
    %c0_i32 = arith.constant 0 : i32
    %c0_i32_0 = arith.constant 0 : i32
    %c0_i32_1 = arith.constant 0 : i32
    return %c0_i32, %c0_i32_0 : i32, i32
  }
  func.func @transform_5(%arg0: i32) -> (i32, i32) {
    %c0_i32 = arith.constant 0 : i32
    %c0_i32_0 = arith.constant 0 : i32
    return %arg0, %c0_i32 : i32, i32
  }
}

</mosaic_0001>

<bundles_post_ra>
// kernel: tpu_custom_call.1
= control target key start
LH: loop header
LB: loop body
LE: loop exit
PB: predicated region body
PF: predicated region fallthrough
CT: control target
= control target key end

     0   :  { %vm47_vm0 = vcmask 195584   ;;  %s3685_s0 = inlined_call_operand.vmem [shape: f32[128,24], index: 0, kind: input, shape index: {}]   ;;  %s3686_s1 = inlined_call_operand.vmem [shape: f32[24,128], index: 1, kind: input, shape index: {}]   ;;  %s3687_s2 = inlined_call_operand.vmem [shape: f32[1,128], index: 2, kind: input, shape index: {}]   ;;  %s3688_s3 = inlined_call_operand.vmem [shape: f32[128,128], index: 3, kind: input, shape index: {}]   ;;  %s3689_s4 = inlined_call_operand.vmem [shape: f32[1,128], index: 4, kind: input, shape index: {}]   ;;  %s3690_s5 = inlined_call_operand.hbm [shape: f32[8,128], index: 5, kind: output, shape index: {}]  }
   0x1   :  { %v37_v0 = vld [vmem:[%s3686_s1] sm:$0xff]  ;;  %v38_v1 = vld [vmem:[%s3686_s1 + $0x8] sm:$0xff]  ;;  %v2949_v2 = vld [vmem:[%s3686_s1 + $0x10] sm:$0xff] }
   0x2   :  { %v97_v3 = vand.u32 4294901760, %v37_v0  ;;  %v100_v4 = vand.u32 4294901760, %v38_v1  ;;  %v21_v5 = vld [vmem:[%s3685_s0] sm:$0xff]  ;;  %v22_v6 = vld [vmem:[%s3685_s0 + $0x8] sm:$0xff]  ;;  %v23_v7 = vld [vmem:[%s3685_s0 + $0x10] sm:$0xff]  ;;  %v2961_v8 = vand.u32 4294901760, %v2949_v2 }
   0x3   :  { %v49_v9 = vsel %vm47_vm0, %v21_v5, 0  ;;  %v52_v10 = vsel %vm47_vm0, %v22_v6, 0  ;;  %v55_v11 = vsel %vm47_vm0, %v23_v7, 0  ;;  %v24_v12 = vld [vmem:[%s3685_s0 + $0x18] sm:$0xff]  ;;  %v25_v13 = vld [vmem:[%s3685_s0 + $0x20] sm:$0xff]  ;;  %v26_v18 = vld [vmem:[%s3685_s0 + $0x28] sm:$0xff] }
   0x4   :  { %v2972_v14 = vpack.c.bf16 %v100_v4, %v97_v3  ;;  %v2974_v15 = vand.u32 4294901760, %v49_v9  ;;  %v2976_v16 = vand.u32 4294901760, %v52_v10  ;;  %v2978_v17 = vsub.f32 %v37_v0, %v97_v3 }
   0x5   :  { %v2983_v19 = vsub.f32 %v38_v1, %v100_v4  ;;  %v2985_v20 = vand.u32 4294901760, %v55_v11  ;;  %v58_v21 = vsel %vm47_vm0, %v24_v12, 0  ;;  %v61_v22 = vsel %vm47_vm0, %v25_v13, 0 }
   0x6   :  { %2604 = vmatprep.subr.bf16.mxu0 %v2972_v14  ;;  %v2991_v23 = vsub.f32 %v49_v9, %v2974_v15  ;;  %v2994_v24 = vsub.f32 %v52_v10, %v2976_v16  ;;  %v327_v25 = vand.u32 4294901760, %v2978_v17  ;;  %v2997_v26 = vand.u32 4294901760, %v58_v21 }
   0x7   :  { %2606 = vmatpush3.bf16.msra.mxu0 %v2972_v14  ;;  %v334_v27 = vand.u32 4294901760, %v2983_v19  ;;  %v3002_v28 = vsub.f32 %v55_v11, %v2985_v20  ;;  %v3004_v29 = vand.u32 4294901760, %v61_v22  ;;  %v64_v30 = vsel %vm47_vm0, %v26_v18, 0 }
   0x8   :  { %10 = vsyncpa [#allocation3], 0  ;;  %2217 = vmatprep.subr.mxu0 %v2961_v8  ;;  %v166_v31 = vand.u32 4294901760, %v2991_v23  ;;  %v176_v32 = vand.u32 4294901760, %v2994_v24  ;;  %v328_v33 = vsub.f32 %v2978_v17, %v327_v25  ;;  %v3014_v34 = vsub.f32 %v58_v21, %v2997_v26  ;;  %v27_v39 = vld [vmem:[%s3685_s0 + $0x30] sm:$0xff]  ;;  %v28_v48 = vld [vmem:[%s3685_s0 + $0x38] sm:$0xff] }
   0x9   :  { %v335_v35 = vsub.f32 %v2983_v19, %v334_v27  ;;  %v186_v36 = vand.u32 4294901760, %v3002_v28  ;;  %v3021_v37 = vsub.f32 %v61_v22, %v3004_v29  ;;  %v3023_v38 = vand.u32 4294901760, %v64_v30  ;;  %v29_v49 = vld [vmem:[%s3685_s0 + $0x40] sm:$0xff]  ;;  %v30_v58 = vld [vmem:[%s3685_s0 + $0x48] sm:$0xff]  ;;  %v31_v59 = vld [vmem:[%s3685_s0 + $0x50] sm:$0xff]  ;;  %s2909_s10 = smov [#allocation2]  }
   0xa   :  { %v167_v40 = vsub.f32 %v2991_v23, %v166_v31  ;;  %v177_v41 = vsub.f32 %v2994_v24, %v176_v32  ;;  %v329_v42 = vand.u32 4294901760, %v328_v33  ;;  %v196_v43 = vand.u32 4294901760, %v3014_v34  ;;  %v32_v5 = vld [vmem:[%s3685_s0 + $0x58] sm:$0xff]  ;;  %v33_v21 = vld [vmem:[%s3685_s0 + $0x60] sm:$0xff]  ;;  %s1987_s11 = sshll.u32 %s2909_s10, 4  ;;  %s1988_s11 = int_to_ptr.vmem [resolvable:$true] %s1987_s11 }
   0xb   :  { %2218 = vmatpush3.msra.mxu0 %v2961_v8  ;;  %v336_v44 = vand.u32 4294901760, %v335_v35  ;;  %v187_v45 = vsub.f32 %v3002_v28, %v186_v36  ;;  %v206_v46 = vand.u32 4294901760, %v3021_v37  ;;  %v3041_v47 = vsub.f32 %v64_v30, %v3023_v38  ;;  %s2882_s12 = scalar_lea.vmem %s1988_s11, 128  ;;  %p2887_p1 = scmp.lt.s32.totalorder %s1988_s11, %s1988_s11 }
   0xc   :  { %v168_v50 = vand.u32 4294901760, %v167_v40  ;;  %v178_v51 = vand.u32 4294901760, %v177_v41  ;;  %v197_v52 = vsub.f32 %v3014_v34, %v196_v43  ;;  %v67_v53 = vsel %vm47_vm0, %v27_v39, 0  ;;  %p2883_p0 = scmp.ne.s32.totalorder %s1988_s11, %s2882_s12  ;;  %p2888_p2 = scmp.lt.s32.totalorder %s2882_s12, %s2882_s12 }
   0xd   :  { %v2607_v54 = vpack.c.bf16 %v336_v44, %v329_v42  ;;  %v188_v55 = vand.u32 4294901760, %v187_v45  ;;  %v207_v56 = vsub.f32 %v3021_v37, %v206_v46  ;;  %v216_v57 = vand.u32 4294901760, %v3041_v47 }
   0xe   :  { %2219 = vmatprep.mubr.f32.mxu0 %v168_v50  ;;  %v198_v60 = vand.u32 4294901760, %v197_v52  ;;  %v3063_v61 = vand.u32 4294901760, %v67_v53  ;;  %v70_v62 = vsel %vm47_vm0, %v28_v48, 0  ;;  %v73_v63 = vsel %vm47_vm0, %v29_v49, 0  ;;  %p2889_p3 = por %p2888_p2, %p2887_p1 }
   0xf   :  { %2220 = vmatmul.mubr.f32.vlgmr.msra.gmra.mrb[0].mxu0 %v178_v51  ;;  %2608 = vmatprep.subr.bf16.mxu0 %v2607_v54  ;;  %v208_v0 = vand.u32 4294901760, %v207_v56  ;;  %v217_v1 = vsub.f32 %v3041_v47, %v216_v57  ;;  %v3070_v3 = vand.u32 4294901760, %v70_v62  ;;  %v3072_v4 = vand.u32 4294901760, %v73_v63 }
  0x10   :  { %2610 = vmatpush3.bf16.msra.mxu0 %v2607_v54  ;;  %2222 = vmatprep.mubr.f32.mxu0 %v188_v55  ;;  %v3078_v6 = vsub.f32 %v67_v53, %v3063_v61  ;;  %v76_v7 = vsel %vm47_vm0, %v30_v58, 0  ;;  %v3083_v9 = vsub.f32 %v2949_v2, %v2961_v8  ;;  %v79_v10 = vsel %vm47_vm0, %v31_v59, 0  ;;  %v34_v53 = vld [vmem:[%s3685_s0 + $0x68] sm:$0xff]  ;;  %v35_v54 = vld [vmem:[%s3685_s0 + $0x70] sm:$0xff]  ;;  %p2890_p4 = pnand %p2889_p3, %p2883_p0 }
  0x11   :  { %v218_v11 = vand.u32 4294901760, %v217_v1  ;;  %v3087_v12 = vsub.f32 %v70_v62, %v3070_v3  ;;  %v3090_v13 = vsub.f32 %v73_v63, %v3072_v4  ;;  %v3092_v18 = vand.u32 4294901760, %v76_v7  ;;  %v36_v1 = vld [vmem:[%s3685_s0 + $0x78] sm:$0xff] }
  0x12   :  { %v226_v22 = vand.u32 4294901760, %v3078_v6  ;;  %v3099_v2 = vand.u32 4294901760, %v3083_v9  ;;  %v3101_v30 = vand.u32 4294901760, %v79_v10  ;;  %v82_v33 = vsel %vm47_vm0, %v32_v5, 0 }
  0x13   :  { %2223 = vmatmul.mubr.f32.gmra.mrb[2].mxu0 %v198_v60  ;;  %v236_v35 = vand.u32 4294901760, %v3087_v12  ;;  %v246_v39 = vand.u32 4294901760, %v3090_v13  ;;  %v3107_v40 = vsub.f32 %v76_v7, %v3092_v18  ;;  %v3109_v41 = vand.u32 4294901760, %v82_v33 }
  0x14   :  { %2225 = vmatprep.mubr.f32.mxu0 %v208_v0  ;;  %v227_v42 = vsub.f32 %v3078_v6, %v226_v22  ;;  %v342_v44 = vsub.f32 %v3083_v9, %v3099_v2  ;;  %v3117_v45 = vsub.f32 %v79_v10, %v3101_v30  ;;  %v85_v48 = vsel %vm47_vm0, %v33_v21, 0 }
  0x15   :  { %v237_v49 = vsub.f32 %v3087_v12, %v236_v35  ;;  %v247_v50 = vsub.f32 %v3090_v13, %v246_v39  ;;  %v256_v51 = vand.u32 4294901760, %v3107_v40  ;;  %v3128_v52 = vsub.f32 %v82_v33, %v3109_v41 }
  0x16   :  { %v228_v55 = vand.u32 4294901760, %v227_v42  ;;  %v343_v56 = vand.u32 4294901760, %v342_v44  ;;  %v266_v58 = vand.u32 4294901760, %v3117_v45  ;;  %v3137_v59 = vand.u32 4294901760, %v85_v48 }
  0x17   :  { %2226 = vmatmul.mubr.f32.gmra.mrb[4].mxu0 %v218_v11  ;;  %v238_v60 = vand.u32 4294901760, %v237_v49  ;;  %v248_v62 = vand.u32 4294901760, %v247_v50  ;;  %v257_v63 = vsub.f32 %v3107_v40, %v256_v51  ;;  %v276_v0 = vand.u32 4294901760, %v3128_v52 }
  0x18   :  { %2228 = vmatprep.mubr.f32.mxu0 %v228_v55  ;;  %2247 = vmatprep.subr.mxu0 %v343_v56  ;;  %v267_v5 = vsub.f32 %v3117_v45, %v266_v58  ;;  %v3150_v7 = vsub.f32 %v85_v48, %v3137_v59  ;;  %v88_v10 = vsel %vm47_vm0, %v34_v53, 0  ;;  %v91_v11 = vsel %vm47_vm0, %v35_v54, 0 }
  0x19   :  { %2248 = vmatpush3.msra.mxu0 %v343_v56  ;;  %v3154_v21 = vand.u32 4294901760, %v88_v10  ;;  %v3156_v33 = vand.u32 4294901760, %v91_v11  ;;  %v258_v42 = vand.u32 4294901760, %v257_v63  ;;  %v94_v49 = vsel %vm47_vm0, %v36_v1, 0 }
  0x1a   :  { %v3691_v44 = vand.u32 4294901760, %v3150_v7  ;;  %v2611_v50 = vpack.c.bf16 %v2983_v19, %v2978_v17  ;;  %v277_v48 = vsub.f32 %v3128_v52, %v276_v0  ;;  %v3171_v55 = vand.u32 4294901760, %v94_v49 }
  0x1b   :  { %2229 = vmatmul.mubr.f32.gmra.mrb[6].mxu0 %v238_v60  ;;  %v3166_v53 = vsub.f32 %v88_v10, %v3154_v21  ;;  %v3169_v54 = vsub.f32 %v91_v11, %v3156_v33  ;;  %v268_v56 = vand.u32 4294901760, %v267_v5  ;;  %v2619_v60 = vpack.c.bf16 %v334_v27, %v327_v25 }
  0x1c   :  { %2231 = vmatprep.mubr.f32.mxu0 %v248_v62  ;;  %v287_v63 = vsub.f32 %v3150_v7, %v3691_v44  ;;  %2612 = vmatprep.subr.bf16.mxu0 %v2611_v50  ;;  %v3183_v11 = vsub.f32 %v94_v49, %v3171_v55  ;;  %v278_v62 = vand.u32 4294901760, %v277_v48  ;;  %vm2907_vm1 = vmmov 0  }
  0x1d   :  { %v296_v1 = vand.u32 4294901760, %v3166_v53  ;;  %v306_v10 = vand.u32 4294901760, %v3169_v54  ;;  %vm1324_vm2 = vcmask 1041409   ;;  %vm1326_vm3 = vcmask 1042434  }
  0x1e   :  { %v316_v44 = vand.u32 4294901760, %v3183_v11  ;;  %v288_v17 = vand.u32 4294901760, %v287_v63  ;;  %vm1328_vm4 = vcmask 1043459   ;;  %vm1330_vm5 = vcmask 1044484  }
  0x1f   :  { %2232 = vmatmul.mubr.f32.gmra.mrb[8].mxu0 %v258_v42  ;;  %v297_v5 = vsub.f32 %v3166_v53, %v296_v1  ;;  %v307_v19 = vsub.f32 %v3169_v54, %v306_v10  ;;  %vm1332_vm6 = vcmask 1045509   ;;  %vm1334_vm7 = vcmask 1046534  }
  0x20   :  { %2234 = vmatprep.mubr.f32.mxu0 %v268_v56  ;;  %v317_v27 = vsub.f32 %v3183_v11, %v316_v44  ;;  %vm1336_vm8 = vcmask 1047559  }
  0x21   :  { %v298_v25 = vand.u32 4294901760, %v297_v5  ;;  %v308_v42 = vand.u32 4294901760, %v307_v19  ;;  %v2908_v5 = vmov 0.0  }
  0x22   :  { %v318_v49 = vand.u32 4294901760, %v317_v27  ;;  %2425 = vmatprep.mubr.msk.f32.mxu1 %vm2907_vm1, %v2908_v5 }
  0x23   :  { %2235 = vmatmul.mubr.f32.gmra.mrb[10].mxu0 %v278_v62 }
  0x24   :  { %2237 = vmatprep.mubr.f32.mxu0 %v288_v17 }
  0x27   :  { %2238 = vmatmul.mubr.f32.gmra.mrb[12].mxu0 %v298_v25 }
  0x28   :  { %2240 = vmatprep.mubr.f32.mxu0 %v308_v42 }
  0x2b   :  { %2241 = vmatmul.mubr.f32.gmra.mrb[14].mxu0 %v318_v49 }
  0x2c   :  { %2249 = vmatprep.mubr.f32.mxu0 %v2974_v15 }
  0x2f   :  { %2250 = vmatmul.mubr.f32.vlgmr.msra.gmra.mrb[0].mxu0 %v2976_v16 }
  0x30   :  { %2614 = vmatpush3.bf16.msra.mxu0 %v2611_v50  ;;  %2252 = vmatprep.mubr.f32.mxu0 %v2985_v20 }
  0x31   :  { %2277 = vmatprep.subr.mxu0 %v3083_v9 }
  0x33   :  { %2253 = vmatmul.mubr.f32.gmra.mrb[2].mxu0 %v2997_v26 }
  0x34   :  { %2255 = vmatprep.mubr.f32.mxu0 %v3004_v29  ;;  %2278 = vmatpush3.msra.mxu0 %v3083_v9 }
  0x35   :  { %2616 = vmatprep.subr.bf16.mxu0 %v2972_v14 }
  0x37   :  { %2256 = vmatmul.mubr.f32.gmra.mrb[4].mxu0 %v3023_v38 }
  0x38   :  { %2258 = vmatprep.mubr.f32.mxu0 %v3063_v61 }
  0x3b   :  { %2259 = vmatmul.mubr.f32.gmra.mrb[6].mxu0 %v3070_v3 }
  0x3c   :  { %2261 = vmatprep.mubr.f32.mxu0 %v3072_v4 }
  0x3f   :  { %2262 = vmatmul.mubr.f32.gmra.mrb[8].mxu0 %v3092_v18 }
  0x40   :  { %2264 = vmatprep.mubr.f32.mxu0 %v3101_v30 }
  0x43   :  { %2265 = vmatmul.mubr.f32.gmra.mrb[10].mxu0 %v3109_v41 }
  0x44   :  { %2267 = vmatprep.mubr.f32.mxu0 %v3137_v59 }
  0x47   :  { %2268 = vmatmul.mubr.f32.gmra.mrb[12].mxu0 %v3154_v21 }
  0x48   :  { %2270 = vmatprep.mubr.f32.mxu0 %v3156_v33 }
  0x4b   :  { %2271 = vmatmul.mubr.f32.gmra.mrb[14].mxu0 %v3171_v55 }
  0x4c   :  { %2279 = vmatprep.mubr.f32.mxu0 %v2991_v23  ;;  %v3708_v23 = vand.u32 4294901760, %v3150_v7 }
  0x4f   :  { %2280 = vmatmul.mubr.f32.vlgmr.msra.gmra.mrb[0].mxu0 %v2994_v24  ;;  %v2906_v24 = vmov 0.0|0.0  }
  0x50   :  { %2618 = vmatpush3.bf16.msra.mxu0 %v2972_v14  ;;  %2282 = vmatprep.mubr.f32.mxu0 %v3002_v28  ;;  %v1296_v28 = vld [vmem:[%s3688_s3 + $0x18] sm:$0xff] }
  0x51   :  { %2307 = vmatprep.subr.mxu0 %v2961_v8  ;;  %2627 = vmatprep.subr.bf16.mxu1 %v2906_v24 }
  0x53   :  { %2283 = vmatmul.mubr.f32.gmra.mrb[2].mxu0 %v3014_v34  ;;  %v1297_v34 = vld [vmem:[%s3688_s3 + $0x20] sm:$0xff] }
  0x54   :  { %2285 = vmatprep.mubr.f32.mxu0 %v3021_v37  ;;  %2308 = vmatpush3.msra.mxu0 %v2961_v8  ;;  %v1352_v37 = vand.u32 4294901760, %v1297_v34 }
  0x55   :  { %2620 = vmatprep.subr.bf16.mxu0 %v2619_v60 }
  0x57   :  { %2286 = vmatmul.mubr.f32.gmra.mrb[4].mxu0 %v3041_v47  ;;  %v1300_v47 = vld [vmem:[%s3688_s3 + $0x38] sm:$0xff] }
  0x58   :  { %2288 = vmatprep.mubr.f32.mxu0 %v3078_v6  ;;  %v1302_v6 = vld [vmem:[%s3688_s3 + $0x48] sm:$0xff] }
  0x5b   :  { %2289 = vmatmul.mubr.f32.gmra.mrb[6].mxu0 %v3087_v12  ;;  %v1367_v12 = vand.u32 4294901760, %v1302_v6 }
  0x5c   :  { %2291 = vmatprep.mubr.f32.mxu0 %v3090_v13 }
  0x5f   :  { %2292 = vmatmul.mubr.f32.gmra.mrb[8].mxu0 %v3107_v40 }
  0x60   :  { %2294 = vmatprep.mubr.f32.mxu0 %v3117_v45  ;;  %v1305_v45 = vld [vmem:[%s3688_s3 + $0x60] sm:$0xff] }
  0x63   :  { %2295 = vmatmul.mubr.f32.gmra.mrb[10].mxu0 %v3128_v52  ;;  %v1307_v52 = vld [vmem:[%s3688_s3 + $0x70] sm:$0xff] }
  0x64   :  { %2297 = vmatprep.mubr.f32.mxu0 %v3150_v7  ;;  %v1382_v56 = vand.u32 4294901760, %v1307_v52 }
  0x67   :  { %2298 = vmatmul.mubr.f32.gmra.mrb[12].mxu0 %v3166_v53 }
  0x68   :  { %2300 = vmatprep.mubr.f32.mxu0 %v3169_v54  ;;  %v1376_v54 = vand.u32 4294901760, %v1305_v45 }
  0x6b   :  { %2301 = vmatmul.mubr.f32.gmra.mrb[14].mxu0 %v3183_v11  ;;  %v3406_v11 = vsub.f32 %v1307_v52, %v1382_v56 }
  0x6c   :  { %2309 = vmatprep.mubr.f32.mxu0 %v166_v31  ;;  %v1349_v31 = vand.u32 4294901760, %v1296_v28 }
  0x6f   :  { %2310 = vmatmul.mubr.f32.vlgmr.msra.gmra.mrb[0].mxu0 %v176_v32 }
  0x70   :  { %2622 = vmatpush3.bf16.msra.mxu0 %v2619_v60  ;;  %2312 = vmatprep.mubr.f32.mxu0 %v186_v36  ;;  %v1298_v36 = vld [vmem:[%s3688_s3 + $0x28] sm:$0xff] }
  0x71   :  { %2337 = vmatprep.subr.mxu0 %v3099_v2 }
  0x73   :  { %2313 = vmatmul.mubr.f32.gmra.mrb[2].mxu0 %v196_v43 }
  0x74   :  { %2315 = vmatprep.mubr.f32.mxu0 %v206_v46  ;;  %2338 = vmatpush3.msra.mxu0 %v3099_v2  ;;  %v1299_v46 = vld [vmem:[%s3688_s3 + $0x30] sm:$0xff] }
  0x75   :  { %2624 = vmatprep.subr.bf16.mxu0 %v2972_v14 }
  0x77   :  { %2316 = vmatmul.mubr.f32.gmra.mrb[4].mxu0 %v216_v57  ;;  %v1358_v57 = vand.u32 4294901760, %v1299_v46 }
  0x78   :  { %2318 = vmatprep.mubr.f32.mxu0 %v226_v22  ;;  %v1304_v22 = vld [vmem:[%s3688_s3 + $0x58] sm:$0xff] }
  0x7b   :  { %2319 = vmatmul.mubr.f32.gmra.mrb[6].mxu0 %v236_v35 }
  0x7c   :  { %2321 = vmatprep.mubr.f32.mxu0 %v246_v39 }
  0x7f   :  { %2322 = vmatmul.mubr.f32.gmra.mrb[8].mxu0 %v256_v51  ;;  %v1306_v51 = vld [vmem:[%s3688_s3 + $0x68] sm:$0xff] }
  0x80   :  { %2324 = vmatprep.mubr.f32.mxu0 %v266_v58  ;;  %v3377_v58 = vsub.f32 %v1297_v34, %v1352_v37 }
  0x83   :  { %2325 = vmatmul.mubr.f32.gmra.mrb[10].mxu0 %v276_v0  ;;  %v3381_v0 = vsub.f32 %v1299_v46, %v1358_v57 }
  0x84   :  { %2327 = vmatprep.mubr.f32.mxu0 %v3708_v23 }
  0x87   :  { %2328 = vmatmul.mubr.f32.gmra.mrb[12].mxu0 %v296_v1  ;;  %v3402_v1 = vsub.f32 %v1305_v45, %v1376_v54 }
  0x88   :  { %2330 = vmatprep.mubr.f32.mxu0 %v306_v10 }
  0x8b   :  { %2331 = vmatmul.mubr.f32.gmra.mrb[14].mxu0 %v316_v44  ;;  %v3390_v44 = vsub.f32 %v1302_v6, %v1367_v12 }
  0x8c   :  { %2339 = vmatprep.mubr.f32.mxu0 %v2974_v15 }
  0x8f   :  { %2340 = vmatmul.mubr.f32.vlgmr.msra.gmra.mrb[0].mxu0 %v2976_v16 }
  0x90   :  { %2626 = vmatpush3.bf16.msra.mxu0 %v2972_v14  ;;  %2342 = vmatprep.mubr.f32.mxu0 %v2985_v20  ;;  %v1294_v14 = vld [vmem:[%s3688_s3 + $0x8] sm:$0xff] }
  0x91   :  { %2367 = vmatprep.subr.mxu0 %v2961_v8 }
  0x93   :  { %2343 = vmatmul.mubr.f32.gmra.mrb[2].mxu0 %v2997_v26 }
  0x94   :  { %2345 = vmatprep.mubr.f32.mxu0 %v3004_v29  ;;  %2368 = vmatpush3.msra.mxu0 %v2961_v8  ;;  %v1293_v8 = vld [vmem:[%s3688_s3] sm:$0xff] }
  0x97   :  { %2346 = vmatmul.mubr.f32.gmra.mrb[4].mxu0 %v3023_v38 }
  0x98   :  { %2348 = vmatprep.mubr.f32.mxu0 %v3063_v61 }
  0x9b   :  { %2349 = vmatmul.mubr.f32.gmra.mrb[6].mxu0 %v3070_v3 }
  0x9c   :  { %2351 = vmatprep.mubr.f32.mxu0 %v3072_v4 }
  0x9f   :  { %2352 = vmatmul.mubr.f32.gmra.mrb[8].mxu0 %v3092_v18 }
  0xa0   :  { %2354 = vmatprep.mubr.f32.mxu0 %v3101_v30 }
  0xa3   :  { %2355 = vmatmul.mubr.f32.gmra.mrb[10].mxu0 %v3109_v41 }
  0xa4   :  { %2357 = vmatprep.mubr.f32.mxu0 %v3137_v59 }
  0xa7   :  { %2358 = vmatmul.mubr.f32.gmra.mrb[12].mxu0 %v3154_v21 }
  0xa8   :  { %2360 = vmatprep.mubr.f32.mxu0 %v3156_v33 }
  0xab   :  { %2361 = vmatmul.mubr.f32.gmra.mrb[14].mxu0 %v3171_v55 }
  0xac   :  { %2369 = vmatprep.mubr.f32.mxu0 %v2974_v15  ;;  %v1340_v15 = vand.u32 4294901760, %v1293_v8 }
  0xae   :  { %v3360_v35 = vsub.f32 %v1293_v8, %v1340_v15 }
  0xaf   :  { %2370 = vmatmul.mubr.f32.vlgmr.msra.gmra.mrb[0].mxu0 %v2976_v16  ;;  %v1343_v16 = vand.u32 4294901760, %v1294_v14 }
  0xb0   :  { %2372 = vmatprep.mubr.f32.mxu0 %v2985_v20  ;;  %v3707_v17 = vand.u32 4294901760, %v3360_v35 }
  0xb1   :  { %v3309_v20 = vpack.c.bf16 %v1343_v16, %v1340_v15  ;;  %v3362_v39 = vsub.f32 %v1294_v14, %v1343_v16 }
  0xb2   :  { %v1434_v27 = vsub.f32 %v3360_v35, %v3707_v17 }
  0xb3   :  { %2373 = vmatmul.mubr.f32.gmra.mrb[2].mxu0 %v2997_v26  ;;  %v1295_v26 = vld [vmem:[%s3688_s3 + $0x10] sm:$0xff]  ;;  %2629 = vmatpush3.bf16.msra.mxu1 %v3309_v20  ;;  %v3706_v19 = vand.u32 4294901760, %v3362_v39 }
  0xb4   :  { %2375 = vmatprep.mubr.f32.mxu0 %v3004_v29  ;;  %v1346_v29 = vand.u32 4294901760, %v1295_v26  ;;  %2630 = vmatprep.subr.bf16.mxu1 %v2906_v24  ;;  %v1435_v49 = vand.u32 4294901760, %v1434_v27 }
  0xb5   :  { %v1441_v42 = vsub.f32 %v3362_v39, %v3706_v19 }
  0xb6   :  { %v3320_v32 = vpack.c.bf16 %v1349_v31, %v1346_v29  ;;  %v3364_v40 = vsub.f32 %v1295_v26, %v1346_v29 }
  0xb7   :  { %2376 = vmatmul.mubr.f32.gmra.mrb[4].mxu0 %v3023_v38  ;;  %v1355_v38 = vand.u32 4294901760, %v1298_v36  ;;  %v1442_v23 = vand.u32 4294901760, %v1441_v42 }
  0xb8   :  { %2378 = vmatprep.mubr.f32.mxu0 %v3063_v61  ;;  %2632 = vmatpush3.bf16.msra.mxu1 %v3320_v32  ;;  %v1361_v61 = vand.u32 4294901760, %v1300_v47  ;;  %v3705_v8 = vand.u32 4294901760, %v3364_v40 }
  0xb9   :  { %2633 = vmatprep.subr.bf16.mxu1 %v2906_v24  ;;  %v3330_v43 = vpack.c.bf16 %v1355_v38, %v1352_v37  ;;  %v3427_v15 = vpack.c.bf16 %v1442_v23, %v1435_v49  ;;  %v3695_v23 = vand.u32 4294901760, %v3402_v1 }
  0xba   :  { %v3383_v7 = vsub.f32 %v1300_v47, %v1361_v61  ;;  %v1448_v16 = vsub.f32 %v3364_v40, %v3705_v8 }
  0xbb   :  { %2379 = vmatmul.mubr.f32.gmra.mrb[6].mxu0 %v3070_v3  ;;  %v3340_v3 = vpack.c.bf16 %v1361_v61, %v1358_v57  ;;  %v3701_v57 = vand.u32 4294901760, %v3381_v0 }
  0xbc   :  { %2381 = vmatprep.mubr.f32.mxu0 %v3072_v4  ;;  %2635 = vmatpush3.bf16.msra.mxu1 %v3330_v43  ;;  %v1301_v4 = vld [vmem:[%s3688_s3 + $0x40] sm:$0xff]  ;;  %v3700_v61 = vand.u32 4294901760, %v3383_v7 }
  0xbd   :  { %2636 = vmatprep.subr.bf16.mxu1 %v2906_v24  ;;  %v1364_v9 = vand.u32 4294901760, %v1301_v4  ;;  %v1476_v6 = vsub.f32 %v3381_v0, %v3701_v57 }
  0xbf   :  { %2382 = vmatmul.mubr.f32.gmra.mrb[8].mxu0 %v3092_v18  ;;  %v3350_v13 = vpack.c.bf16 %v1367_v12, %v1364_v9  ;;  %v1303_v18 = vld [vmem:[%s3688_s3 + $0x50] sm:$0xff]  ;;  %v1477_v12 = vand.u32 4294901760, %v1476_v6 }
  0xc0   :  { %2384 = vmatprep.mubr.f32.mxu0 %v3101_v30  ;;  %2638 = vmatpush3.bf16.msra.mxu1 %v3340_v3  ;;  %v1370_v2 = vand.u32 4294901760, %v1303_v18  ;;  %v1373_v30 = vand.u32 4294901760, %v1304_v22 }
  0xc1   :  { %2639 = vmatprep.subr.bf16.mxu1 %v2906_v24 }
  0xc2   :  { %v3392_v50 = vpack.c.bf16 %v1373_v30, %v1370_v2  ;;  %v3394_v48 = vsub.f32 %v1303_v18, %v1370_v2  ;;  %v3396_v53 = vsub.f32 %v1304_v22, %v1373_v30  ;;  %v3698_v2 = vand.u32 4294901760, %v3390_v44 }
  0xc3   :  { %2385 = vmatmul.mubr.f32.gmra.mrb[10].mxu0 %v3109_v41  ;;  %v3366_v41 = vsub.f32 %v1296_v28, %v1349_v31  ;;  %v1449_v28 = vand.u32 4294901760, %v1448_v16  ;;  %v3703_v31 = vand.u32 4294901760, %v3377_v58 }
  0xc4   :  { %2387 = vmatprep.mubr.f32.mxu0 %v3137_v59  ;;  %2641 = vmatpush3.bf16.msra.mxu1 %v3350_v13  ;;  %v3379_v59 = vsub.f32 %v1298_v36, %v1355_v38 }
  0xc5   :  { %2642 = vmatprep.subr.bf16.mxu1 %v2906_v24  ;;  %v3704_v14 = vand.u32 4294901760, %v3366_v41  ;;  %v1462_v37 = vsub.f32 %v3377_v58, %v3703_v31 }
  0xc6   :  { %v3702_v34 = vand.u32 4294901760, %v3379_v59 }
  0xc7   :  { %2388 = vmatmul.mubr.f32.gmra.mrb[12].mxu0 %v3154_v21  ;;  %v1308_v21 = vld [vmem:[%s3688_s3 + $0x78] sm:$0xff]  ;;  %v1455_v26 = vsub.f32 %v3366_v41, %v3704_v14  ;;  %v1463_v46 = vand.u32 4294901760, %v1462_v37 }
  0xc8   :  { %2390 = vmatprep.mubr.f32.mxu0 %v3156_v33  ;;  %v3388_v33 = vsub.f32 %v1301_v4, %v1364_v9  ;;  %2644 = vmatpush3.bf16.msra.mxu1 %v3392_v50  ;;  %v1385_v63 = vand.u32 4294901760, %v1308_v21  ;;  %v1469_v38 = vsub.f32 %v3379_v59, %v3702_v34  ;;  %v1483_v9 = vsub.f32 %v3383_v7, %v3700_v61 }
  0xc9   :  { %2645 = vmatprep.subr.bf16.mxu1 %v2906_v24  ;;  %v1456_v29 = vand.u32 4294901760, %v1455_v26 }
  0xca   :  { %v3408_v62 = vsub.f32 %v1308_v21, %v1385_v63  ;;  %v3415_v25 = vpack.c.bf16 %v1385_v63, %v1382_v56  ;;  %v1470_v47 = vand.u32 4294901760, %v1469_v38  ;;  %v1484_v18 = vand.u32 4294901760, %v1483_v9 }
  0xcb   :  { %2391 = vmatmul.mubr.f32.gmra.mrb[14].mxu0 %v3171_v55  ;;  %v1379_v55 = vand.u32 4294901760, %v1306_v51  ;;  %v3438_v36 = vpack.c.bf16 %v1456_v29, %v1449_v28  ;;  %v3699_v22 = vand.u32 4294901760, %v3388_v33  ;;  %v1518_v28 = vsub.f32 %v3402_v1, %v3695_v23 }
  0xcc   :  { %v3448_v4 = vpack.c.bf16 %v1470_v47, %v1463_v46  ;;  %v3458_v30 = vpack.c.bf16 %v1484_v18, %v1477_v12  ;;  %v3693_v46 = vand.u32 4294901760, %v3406_v11  ;;  %v3692_v47 = vand.u32 4294901760, %v3408_v62 }
  0xcd   :  { %v3400_v60 = vpack.c.bf16 %v1379_v55, %v1376_v54  ;;  %v3404_v10 = vsub.f32 %v1306_v51, %v1379_v55  ;;  %v1490_v45 = vsub.f32 %v3388_v33, %v3699_v22  ;;  %v1497_v51 = vsub.f32 %v3390_v44, %v3698_v2 }
  0xce   :  { %v3697_v54 = vand.u32 4294901760, %v3394_v48  ;;  %v3696_v55 = vand.u32 4294901760, %v3396_v53  ;;  %v1519_v37 = vand.u32 4294901760, %v1518_v28  ;;  %v1532_v9 = vsub.f32 %v3406_v11, %v3693_v46 }
  0xcf   :  { %2647 = vmatpush3.bf16.msra.mxu1 %v3400_v60  ;;  %v1491_v52 = vand.u32 4294901760, %v1490_v45  ;;  %v1498_v21 = vand.u32 4294901760, %v1497_v51  ;;  %v3694_v16 = vand.u32 4294901760, %v3404_v10  ;;  %v1539_v12 = vsub.f32 %v3408_v62, %v3692_v47 }
  0xd0   :  { %2648 = vmatprep.subr.bf16.mxu1 %v2906_v24  ;;  %v1504_v63 = vsub.f32 %v3394_v48, %v3697_v54  ;;  %v1511_v27 = vsub.f32 %v3396_v53, %v3696_v55  ;;  %v1533_v18 = vand.u32 4294901760, %v1532_v9 }
  0xd1   :  { %v3468_v56 = vpack.c.bf16 %v1498_v21, %v1491_v52  ;;  %v1525_v29 = vsub.f32 %v3404_v10, %v3694_v16  ;;  %v1540_v45 = vand.u32 4294901760, %v1539_v12 }
  0xd2   :  { %v1505_v42 = vand.u32 4294901760, %v1504_v63  ;;  %v1512_v49 = vand.u32 4294901760, %v1511_v27 }
  0xd3   :  { %2650 = vmatpush3.bf16.msra.mxu1 %v3415_v25  ;;  %v1526_v38 = vand.u32 4294901760, %v1525_v29  ;;  %v3496_v51 = vpack.c.bf16 %v1540_v45, %v1533_v18 }
  0xd4   :  { %2651 = vmatprep.subr.bf16.mxu1 %v2906_v24  ;;  %v3478_v26 = vpack.c.bf16 %v1512_v49, %v1505_v42 }
  0xd5   :  { %v3488_v6 = vpack.c.bf16 %v1526_v38, %v1519_v37  ;;  %v3517_v37 = vld [vmem:[%s3687_s2] ss:$0 sm:$0xff] }
 0x182   :  { %v2371_v38 = vpop.f32.mrb[0].mxu0 }
 0x183   :  { %v2771_v9 = vadd.f32 %v2371_v38, %v3517_v37  ;;  %v1119_v12 = vpop.f32.mrb[1].mxu0 }
 0x184   :  { %v2772_v18 = vadd.f32 %v3517_v37, %v1119_v12 }
 0x185   :  { %v1214_v45 = vmax.f32 %v2771_v9, 0.0 }
 0x186   :  { %v1213_v47 = vmax.f32 %v2772_v18, 0.0  ;;  %v2374_v46 = vpop.f32.mrb[2].mxu0 }
 0x187   :  { %v2773_v16 = vadd.f32 %v2374_v46, %v3517_v37  ;;  %v1131_v23 = vpop.f32.mrb[3].mxu0 }
 0x188   :  { %v1229_v55 = vadd.f32 %v1214_v45, %v1213_v47  ;;  %v2774_v54 = vadd.f32 %v3517_v37, %v1131_v23 }
 0x189   :  { %v1216_v2 = vmax.f32 %v2773_v16, 0.0 }
 0x18a   :  { %v1230_v22 = vrot.slane %v1229_v55, 4  ;;  %v1215_v61 = vmax.f32 %v2774_v54, 0.0  ;;  %v2377_v57 = vpop.f32.mrb[4].mxu0 }
 0x18b   :  { %v2775_v34 = vadd.f32 %v2377_v57, %v3517_v37  ;;  %v1143_v31 = vpop.f32.mrb[5].mxu0 }
 0x18c   :  { %v1231_v38 = vadd.f32 %v1230_v22, %v1229_v55  ;;  %v1236_v14 = vadd.f32 %v1216_v2, %v1215_v61  ;;  %v2776_v12 = vadd.f32 %v3517_v37, %v1143_v31 }
 0x18d   :  { %v1218_v9 = vmax.f32 %v2775_v34, 0.0 }
 0x18e   :  { %v1232_v18 = vrot.slane %v1231_v38, 2  ;;  %v1237_v8 = vrot.slane %v1236_v14, 4  ;;  %v1217_v19 = vmax.f32 %v2776_v12, 0.0  ;;  %v2380_v46 = vpop.f32.mrb[6].mxu0 }
 0x18f   :  { %v2777_v47 = vadd.f32 %v2380_v46, %v3517_v37  ;;  %v1155_v45 = vpop.f32.mrb[7].mxu0 }
 0x190   :  { %v1233_v23 = vadd.f32 %v1232_v18, %v1231_v38  ;;  %v1238_v16 = vadd.f32 %v1237_v8, %v1236_v14  ;;  %v1243_v17 = vadd.f32 %v1218_v9, %v1217_v19  ;;  %v2778_v54 = vadd.f32 %v3517_v37, %v1155_v45 }
 0x191   :  { %v1220_v29 = vmax.f32 %v2777_v47, 0.0 }
 0x192   :  { %v1234_v57 = vrot.slane %v1233_v23, 1  ;;  %v1239_v28 = vrot.slane %v1238_v16, 2  ;;  %v1244_v22 = vrot.slane %v1243_v17, 4  ;;  %v1219_v61 = vmax.f32 %v2778_v54, 0.0  ;;  %v2383_v2 = vpop.f32.mrb[8].mxu0 }
 0x193   :  { %v2779_v31 = vadd.f32 %v2383_v2, %v3517_v37  ;;  %v1167_v34 = vpop.f32.mrb[9].mxu0 }
 0x194   :  { %v1240_v55 = vadd.f32 %v1239_v28, %v1238_v16  ;;  %v1245_v12 = vadd.f32 %v1244_v22, %v1243_v17  ;;  %v1250_v49 = vadd.f32 %v1220_v29, %v1219_v61  ;;  %v1235_v42 = vadd.f32 %v1234_v57, %v1233_v23 }
 0x195   :  { %v1222_v46 = vmax.f32 %v2779_v31, 0.0  ;;  %v2780_v38 = vadd.f32 %v3517_v37, %v1167_v34 }
 0x196   :  { %v1241_v8 = vrot.slane %v1240_v55, 1  ;;  %v1246_v19 = vrot.slane %v1245_v12, 2  ;;  %v1251_v14 = vrot.slane %v1250_v49, 4  ;;  %v2386_v9 = vpop.f32.mrb[10].mxu0  ;;  %v1285_v28 = vmul.f32 0.0625, %v1235_v42 }
 0x197   :  { %v1221_v18 = vmax.f32 %v2780_v38, 0.0  ;;  %v2781_v47 = vadd.f32 %v2386_v9, %v3517_v37  ;;  %v1179_v45 = vpop.f32.mrb[11].mxu0 }
 0x198   :  { %v1242_v54 = vadd.f32 %v1241_v8, %v1240_v55  ;;  %v1247_v27 = vadd.f32 %v1246_v19, %v1245_v12  ;;  %v1252_v63 = vadd.f32 %v1251_v14, %v1250_v49  ;;  %v2782_v2 = vadd.f32 %v3517_v37, %v1179_v45 }
 0x199   :  { %v1257_v17 = vadd.f32 %v1222_v46, %v1221_v18  ;;  %v1224_v29 = vmax.f32 %v2781_v47, 0.0 }
 0x19a   :  { %v1286_v23 = vmul.f32 0.0625, %v1242_v54  ;;  %v1248_v16 = vrot.slane %v1247_v27, 1  ;;  %v1253_v57 = vrot.slane %v1252_v63, 2  ;;  %v1223_v22 = vmax.f32 %v2782_v2, 0.0  ;;  %v2389_v61 = vpop.f32.mrb[12].mxu0 }
 0x19b   :  { %v1258_v31 = vrot.slane %v1257_v17, 4  ;;  %v2783_v34 = vadd.f32 %v2389_v61, %v3517_v37  ;;  %v1191_v38 = vpop.f32.mrb[13].mxu0 }
 0x19c   :  { %v1325_v9 = vsel %vm1324_vm2, %v1286_v23, %v1285_v28  ;;  %v1249_v21 = vadd.f32 %v1248_v16, %v1247_v27  ;;  %v1254_v55 = vadd.f32 %v1253_v57, %v1252_v63  ;;  %v1264_v12 = vadd.f32 %v1224_v29, %v1223_v22 }
 0x19d   :  { %v1259_v49 = vadd.f32 %v1258_v31, %v1257_v17  ;;  %v1226_v8 = vmax.f32 %v2783_v34, 0.0  ;;  %v2784_v42 = vadd.f32 %v3517_v37, %v1191_v38 }
 0x19e   :  { %v1287_v46 = vmul.f32 0.0625, %v1249_v21  ;;  %v1255_v19 = vrot.slane %v1254_v55, 1  ;;  %v1265_v14 = vrot.slane %v1264_v12, 4  ;;  %v2392_v18 = vpop.f32.mrb[14].mxu0 }
 0x19f   :  { %v1260_v47 = vrot.slane %v1259_v49, 2  ;;  %v1225_v45 = vmax.f32 %v2784_v42, 0.0  ;;  %v2785_v54 = vadd.f32 %v2392_v18, %v3517_v37  ;;  %v1203_v2 = vpop.f32.mrb[15].mxu0 }
 0x1a0   :  { %v1327_v61 = vsel %vm1326_vm3, %v1287_v46, %v1325_v9  ;;  %v1256_v52 = vadd.f32 %v1255_v19, %v1254_v55  ;;  %v1266_v28 = vadd.f32 %v1265_v14, %v1264_v12  ;;  %v2786_v63 = vadd.f32 %v3517_v37, %v1203_v2 }
 0x1a1   :  { %v1261_v27 = vadd.f32 %v1260_v47, %v1259_v49  ;;  %v1271_v17 = vadd.f32 %v1226_v8, %v1225_v45  ;;  %v1228_v29 = vmax.f32 %v2785_v54, 0.0 }
 0x1a2   :  { %v1288_v23 = vmul.f32 0.0625, %v1256_v52  ;;  %v1267_v16 = vrot.slane %v1266_v28, 2  ;;  %v1227_v21 = vmax.f32 %v2786_v63, 0.0 }
 0x1a3   :  { %v1262_v57 = vrot.slane %v1261_v27, 1  ;;  %v1272_v22 = vrot.slane %v1271_v17, 4 }
 0x1a4   :  { %v1329_v31 = vsel %vm1328_vm4, %v1288_v23, %v1327_v61  ;;  %v1268_v34 = vadd.f32 %v1267_v16, %v1266_v28  ;;  %v1278_v38 = vadd.f32 %v1228_v29, %v1227_v21 }
 0x1a5   :  { %v1263_v42 = vadd.f32 %v1262_v57, %v1261_v27  ;;  %v1273_v18 = vadd.f32 %v1272_v22, %v1271_v17 }
 0x1a6   :  { %v1269_v9 = vrot.slane %v1268_v34, 1  ;;  %v1279_v55 = vrot.slane %v1278_v38, 4 }
 0x1a7   :  { %v1289_v12 = vmul.f32 0.0625, %v1263_v42  ;;  %v1274_v46 = vrot.slane %v1273_v18, 2  ;;  %v3719_v42 = vand.u32 4294901760, %v3364_v40 }
 0x1a8   :  { %v1270_v37 = vadd.f32 %v1269_v9, %v1268_v34  ;;  %v1280_v19 = vadd.f32 %v1279_v55, %v1278_v38  ;;  %v3718_v34 = vand.u32 4294901760, %v3362_v39 }
 0x1a9   :  { %v1331_v49 = vsel %vm1330_vm5, %v1289_v12, %v1329_v31  ;;  %v1275_v8 = vadd.f32 %v1274_v46, %v1273_v18  ;;  %v3717_v31 = vand.u32 4294901760, %v3360_v35  ;;  %v3720_v18 = vand.u32 4294901760, %v3366_v41 }
 0x1aa   :  { %v1290_v52 = vmul.f32 0.0625, %v1270_v37  ;;  %v1281_v14 = vrot.slane %v1280_v19, 2  ;;  %v3723_v12 = vand.u32 4294901760, %v3381_v0  ;;  %v3725_v46 = vand.u32 4294901760, %v3388_v33 }
 0x1ab   :  { %v1276_v47 = vrot.slane %v1275_v8, 1  ;;  %v2724_v38 = vpack.c.bf16 %v3718_v34, %v3717_v31  ;;  %v2727_v9 = vpack.c.bf16 %v3720_v18, %v3719_v42  ;;  %v3726_v37 = vand.u32 4294901760, %v3390_v44 }
 0x1ac   :  { %v1333_v45 = vsel %vm1332_vm6, %v1290_v52, %v1331_v49  ;;  %v1282_v54 = vadd.f32 %v1281_v14, %v1280_v19 }
 0x1ad   :  { %v1277_v2 = vadd.f32 %v1276_v47, %v1275_v8  ;;  %v2736_v19 = vpack.c.bf16 %v3726_v37, %v3725_v46 }
 0x1ae   :  { %v1283_v61 = vrot.slane %v1282_v54, 1 }
 0x1af   :  { %v1291_v28 = vmul.f32 0.0625, %v1277_v2 }
 0x1b0   :  { %v1284_v63 = vadd.f32 %v1283_v61, %v1282_v54 }
 0x1b1   :  { %v1335_v27 = vsel %vm1334_vm7, %v1291_v28, %v1333_v45 }
 0x1b2   :  { %v1292_v17 = vmul.f32 0.0625, %v1284_v63 }
 0x1b4   :  { %v1337_v29 = vsel %vm1336_vm8, %v1292_v17, %v1335_v27 }
 0x1b5   :  { %v3535_v23 = vand.u32 4294901760, %v1337_v29 }
 0x1b7   :  { %v1421_v16 = vsub.f32 %v1337_v29, %v3535_v23 }
 0x1b9   :  { %v1422_v21 = vand.u32 4294901760, %v1421_v16 }
 0x1bb   :  { %v1423_v57 = vsub.f32 %v1421_v16, %v1422_v21 }
 0x1bd   :  { %v1424_v22 = vand.u32 4294901760, %v1423_v57 }
 0x1bf   :  { %2426 = vmatmul.mubr.f32.vlgmr.msra.gmra.mrb[0].mxu1 %v1424_v22 }
 0x1c0   :  { %2653 = vmatpush3.bf16.msra.mxu1 %v3427_v15  ;;  %2460 = vmatprep.mubr.msk.f32.mxu1 %vm2907_vm1, %v2908_v5  ;;  %v3709_v15 = vpack.c.bf16 %v3362_v39, %v3360_v35  ;;  %v3721_v35 = vand.u32 4294901760, %v3377_v58  ;;  %v3722_v39 = vand.u32 4294901760, %v3379_v59 }
 0x1c1   :  { %2654 = vmatprep.subr.bf16.mxu1 %v2906_v24 }
 0x1c2   :  { %v2730_v55 = vpack.c.bf16 %v3722_v39, %v3721_v35 }
 0x1c4   :  { %2656 = vmatpush3.bf16.msra.mxu1 %v3438_v36  ;;  %v3710_v36 = vpack.c.bf16 %v3366_v41, %v3364_v40  ;;  %v3724_v40 = vand.u32 4294901760, %v3383_v7 }
 0x1c5   :  { %2657 = vmatprep.subr.bf16.mxu1 %v2906_v24 }
 0x1c6   :  { %v2733_v41 = vpack.c.bf16 %v3724_v40, %v3723_v12 }
 0x1c8   :  { %2659 = vmatpush3.bf16.msra.mxu1 %v3448_v4  ;;  %v3711_v4 = vpack.c.bf16 %v3379_v59, %v3377_v58  ;;  %v3727_v58 = vand.u32 4294901760, %v3394_v48  ;;  %v3728_v59 = vand.u32 4294901760, %v3396_v53 }
 0x1c9   :  { %2660 = vmatprep.subr.bf16.mxu1 %v2906_v24 }
 0x1ca   :  { %v2739_v49 = vpack.c.bf16 %v3728_v59, %v3727_v58 }
 0x1cc   :  { %2662 = vmatpush3.bf16.msra.mxu1 %v3458_v30  ;;  %v3712_v30 = vpack.c.bf16 %v3383_v7, %v3381_v0  ;;  %v3729_v0 = vand.u32 4294901760, %v3402_v1  ;;  %v3730_v7 = vand.u32 4294901760, %v3404_v10 }
 0x1cd   :  { %2663 = vmatprep.subr.bf16.mxu1 %v2906_v24 }
 0x1ce   :  { %v2742_v8 = vpack.c.bf16 %v3730_v7, %v3729_v0 }
 0x1d0   :  { %2665 = vmatpush3.bf16.msra.mxu1 %v3468_v56  ;;  %v3713_v56 = vpack.c.bf16 %v3390_v44, %v3388_v33  ;;  %v3731_v33 = vand.u32 4294901760, %v3406_v11  ;;  %v3732_v44 = vand.u32 4294901760, %v3408_v62 }
 0x1d1   :  { %2666 = vmatprep.subr.bf16.mxu1 %v2906_v24 }
 0x1d2   :  { %v2745_v52 = vpack.c.bf16 %v3732_v44, %v3731_v33 }
 0x1d4   :  { %2668 = vmatpush3.bf16.msra.mxu1 %v3478_v26  ;;  %v3714_v26 = vpack.c.bf16 %v3396_v53, %v3394_v48 }
 0x1d5   :  { %2669 = vmatprep.subr.bf16.mxu1 %v2906_v24 }
 0x1d8   :  { %2671 = vmatpush3.bf16.msra.mxu1 %v3488_v6  ;;  %v3715_v6 = vpack.c.bf16 %v3404_v10, %v3402_v1 }
 0x1d9   :  { %2672 = vmatprep.subr.bf16.mxu1 %v2906_v24 }
 0x1dc   :  { %2674 = vmatpush3.bf16.msra.mxu1 %v3496_v51  ;;  %v3716_v51 = vpack.c.bf16 %v3408_v62, %v3406_v11 }
 0x1dd   :  { %2675 = vmatprep.subr.bf16.mxu1 %v2906_v24 }
 0x1df   :  { %2461 = vmatmul.mubr.f32.vlgmr.msra.gmra.mrb[0].mxu1 %v3535_v23 }
 0x1e0   :  { %2677 = vmatpush3.bf16.msra.mxu1 %v3709_v15  ;;  %2495 = vmatprep.mubr.msk.f32.mxu1 %vm2907_vm1, %v2908_v5 }
 0x1e1   :  { %2678 = vmatprep.subr.bf16.mxu1 %v2906_v24 }
 0x1e4   :  { %2680 = vmatpush3.bf16.msra.mxu1 %v3710_v36 }
 0x1e5   :  { %2681 = vmatprep.subr.bf16.mxu1 %v2906_v24 }
 0x1e8   :  { %2683 = vmatpush3.bf16.msra.mxu1 %v3711_v4 }
 0x1e9   :  { %2684 = vmatprep.subr.bf16.mxu1 %v2906_v24 }
 0x1ec   :  { %2686 = vmatpush3.bf16.msra.mxu1 %v3712_v30 }
 0x1ed   :  { %2687 = vmatprep.subr.bf16.mxu1 %v2906_v24 }
 0x1f0   :  { %2689 = vmatpush3.bf16.msra.mxu1 %v3713_v56 }
 0x1f1   :  { %2690 = vmatprep.subr.bf16.mxu1 %v2906_v24 }
 0x1f4   :  { %2692 = vmatpush3.bf16.msra.mxu1 %v3714_v26 }
 0x1f5   :  { %2693 = vmatprep.subr.bf16.mxu1 %v2906_v24 }
 0x1f8   :  { %2695 = vmatpush3.bf16.msra.mxu1 %v3715_v6 }
 0x1f9   :  { %2696 = vmatprep.subr.bf16.mxu1 %v2906_v24 }
 0x1fc   :  { %2698 = vmatpush3.bf16.msra.mxu1 %v3716_v51 }
 0x1fd   :  { %2699 = vmatprep.subr.bf16.mxu1 %v2906_v24 }
 0x1ff   :  { %2496 = vmatmul.mubr.f32.vlgmr.msra.gmra.mrb[0].mxu1 %v1421_v16 }
 0x200   :  { %2701 = vmatpush3.bf16.msra.mxu1 %v3309_v20  ;;  %2530 = vmatprep.mubr.msk.f32.mxu1 %vm2907_vm1, %v2908_v5 }
 0x201   :  { %2702 = vmatprep.subr.bf16.mxu1 %v2906_v24 }
 0x204   :  { %2704 = vmatpush3.bf16.msra.mxu1 %v3320_v32 }
 0x205   :  { %2705 = vmatprep.subr.bf16.mxu1 %v2906_v24 }
 0x208   :  { %2707 = vmatpush3.bf16.msra.mxu1 %v3330_v43 }
 0x209   :  { %2708 = vmatprep.subr.bf16.mxu1 %v2906_v24 }
 0x20c   :  { %2710 = vmatpush3.bf16.msra.mxu1 %v3340_v3 }
 0x20d   :  { %2711 = vmatprep.subr.bf16.mxu1 %v2906_v24 }
 0x210   :  { %2713 = vmatpush3.bf16.msra.mxu1 %v3350_v13 }
 0x211   :  { %2714 = vmatprep.subr.bf16.mxu1 %v2906_v24 }
 0x214   :  { %2716 = vmatpush3.bf16.msra.mxu1 %v3392_v50 }
 0x215   :  { %2717 = vmatprep.subr.bf16.mxu1 %v2906_v24 }
 0x218   :  { %2719 = vmatpush3.bf16.msra.mxu1 %v3400_v60 }
 0x219   :  { %2720 = vmatprep.subr.bf16.mxu1 %v2906_v24 }
 0x21c   :  { %2722 = vmatpush3.bf16.msra.mxu1 %v3415_v25 }
 0x21d   :  { %2723 = vmatprep.subr.bf16.mxu1 %v2906_v24 }
 0x21f   :  { %2531 = vmatmul.mubr.f32.vlgmr.msra.gmra.mrb[0].mxu1 %v1422_v21 }
 0x220   :  { %2725 = vmatpush3.bf16.msra.mxu1 %v2724_v38  ;;  %2565 = vmatprep.mubr.msk.f32.mxu1 %vm2907_vm1, %v2908_v5 }
 0x221   :  { %2726 = vmatprep.subr.bf16.mxu1 %v2906_v24 }
 0x224   :  { %2728 = vmatpush3.bf16.msra.mxu1 %v2727_v9 }
 0x225   :  { %2729 = vmatprep.subr.bf16.mxu1 %v2906_v24 }
 0x228   :  { %2731 = vmatpush3.bf16.msra.mxu1 %v2730_v55 }
 0x229   :  { %2732 = vmatprep.subr.bf16.mxu1 %v2906_v24 }
 0x22c   :  { %2734 = vmatpush3.bf16.msra.mxu1 %v2733_v41 }
 0x22d   :  { %2735 = vmatprep.subr.bf16.mxu1 %v2906_v24 }
 0x230   :  { %2737 = vmatpush3.bf16.msra.mxu1 %v2736_v19 }
 0x231   :  { %2738 = vmatprep.subr.bf16.mxu1 %v2906_v24 }
 0x234   :  { %2740 = vmatpush3.bf16.msra.mxu1 %v2739_v49 }
 0x235   :  { %2741 = vmatprep.subr.bf16.mxu1 %v2906_v24 }
 0x238   :  { %2743 = vmatpush3.bf16.msra.mxu1 %v2742_v8 }
 0x239   :  { %2744 = vmatprep.subr.bf16.mxu1 %v2906_v24 }
 0x23c   :  { %2746 = vmatpush3.bf16.msra.mxu1 %v2745_v52 }
 0x23d   :  { %2747 = vmatprep.subr.bf16.mxu1 %v2906_v24 }
 0x23f   :  { %2566 = vmatmul.mubr.f32.vlgmr.msra.gmra.mrb[0].mxu1 %v3535_v23 }
 0x240   :  { %2749 = vmatpush3.bf16.msra.mxu1 %v3309_v20  ;;  %2600 = vmatprep.mubr.msk.f32.mxu1 %vm2907_vm1, %v2908_v5  ;;  %v1996_v20 = vld [vmem:[%s3689_s4] ss:$0 sm:$0xff] }
 0x241   :  { %2750 = vmatprep.subr.bf16.mxu1 %v2906_v24 }
 0x244   :  { %2752 = vmatpush3.bf16.msra.mxu1 %v3320_v32 }
 0x245   :  { %2753 = vmatprep.subr.bf16.mxu1 %v2906_v24 }
 0x248   :  { %2755 = vmatpush3.bf16.msra.mxu1 %v3330_v43 }
 0x249   :  { %2756 = vmatprep.subr.bf16.mxu1 %v2906_v24 }
 0x24c   :  { %2758 = vmatpush3.bf16.msra.mxu1 %v3340_v3 }
 0x24d   :  { %2759 = vmatprep.subr.bf16.mxu1 %v2906_v24 }
 0x250   :  { %2761 = vmatpush3.bf16.msra.mxu1 %v3350_v13 }
 0x251   :  { %2762 = vmatprep.subr.bf16.mxu1 %v2906_v24 }
 0x254   :  { %2764 = vmatpush3.bf16.msra.mxu1 %v3392_v50 }
 0x255   :  { %2765 = vmatprep.subr.bf16.mxu1 %v2906_v24 }
 0x258   :  { %2767 = vmatpush3.bf16.msra.mxu1 %v3400_v60 }
 0x259   :  { %2768 = vmatprep.subr.bf16.mxu1 %v2906_v24 }
 0x25c   :  { %2770 = vmatpush3.bf16.msra.mxu1 %v3415_v25 }
 0x25f   :  { %2601 = vmatmul.mubr.f32.vlgmr.msra.gmra.mrb[0].mxu1 %v3535_v23 }
 0x332   :  { %v1976_v32 = vpop.f32.mrb[0].mxu1 }
 0x333   :  { %v2787_v43 = vadd.f32 %v1996_v20, %v1976_v32  ;;  %v2602_v3 = vpop.f32.mrb[1].mxu1 }
 0x335   :  { %1980 = vst [vmem:[#allocation2] sm:$0xff] %v2787_v43 }
 0x336   :  { %2893 = shalt.err (!%p2890_p4)
}
 0x337   :  { %s2894_s15 = scalar_lea.hbm %s3690_s5, 128 }
 0x338   :  { %p2895_p5 = scmp.ne.s32.totalorder %s3690_s5, %s2894_s15  ;;  %p2898_p6 = scmp.lt.u32.totalorder %s2894_s15, %s3690_s5 }
 0x33a   :  { %p2900_p7 = pnand %p2898_p6, %p2895_p5 }
 0x33c   :  { %2903 = shalt.err (!%p2900_p7)
}
 0x33d   :  { %1990 = dma.vmem_to_hbm [thread:$0]  %s1988_s11, 128, %s3690_s5, [#allocation3]  }
 0x33e   :  { %2904 = dma.done.wait [#allocation3], 128  }
 0x33f   :  { %2905 = vsyncadd [#allocation3], 4294967168 }
 0x340   :  { %1994 = vsyncpa [#allocation3], 1 }

</bundles_post_ra>
